<compile_context>
chip_gen: v7x
topology: tpu7x:2x2x1
jax: 0.10.0
libtpu: 0.0.40
codegen_flags: <defaults>
</compile_context>

<pallas_src>
import jax
import jax.numpy as jnp
from jax.experimental import pallas as pl
from jax.experimental.pallas import tpu as pltpu  # noqa: F401

# ----------------------------- config (small) -----------------------------
B = 2            # batch
SEQ_LEN = 16     # T
PRED_LEN = 8
ENC_IN = 4       # N (variables)
D_MODEL = 32
CHUNK = min(PRED_LEN, SEQ_LEN, 24)        # = 8
NUM_CHUNKS = SEQ_LEN // CHUNK             # = 2
HID1 = D_MODEL // 4                       # layer_1 / layer_2 hid_dim = 8
HID3 = D_MODEL // 2                       # layer_3 hid_dim = 16


# --------------------------- fused Pallas kernel ---------------------------
def _fused_kernel(xt_ref, u1_ref, u2_ref,                         # data
                  arw_ref, arb_ref,                                # ar highway
                  w1a_ref, b1a_ref, w2a_ref, b2a_ref, g1_ref, woa_ref, boa_ref,
                  w1b_ref, b1b_ref, w2b_ref, b2b_ref, g2_ref, wob_ref, bob_ref,
                  w3t_ref, w3b_ref, b13_ref, w23_ref, b23_ref,
                  a3_ref, bc3_ref, wo3_ref, bo3_ref,
                  o_ref):
    dot = lambda a, b: jnp.dot(a, b, preferred_element_type=jnp.float32)
    leaky = lambda v: jnp.where(v > 0, v, jnp.float32(0.01) * v)   # LeakyReLU(0.01)

    # AR highway: (B*N, T) @ (T, P) -> (B*N, P)
    hw = dot(xt_ref[...], arw_ref[...]) + arb_ref[...]

    # One sampling branch: IEBlock + chunk_proj folded into four 2-D matmuls.
    def branch(u, w1, b1, w2, b2, g, wo, bo):
        h = leaky(dot(u, w1) + b1)        # (B*N*nc, hid)
        h = dot(h, w2) + b2               # (B*N*nc, hid//4)
        s = dot(g, h)                     # (B*N, hid//4)  block-diag (I+Wc) + chunk_proj
        return dot(s, wo) + bo            # (B*N, d_model//4)

    r1 = branch(u1_ref[...], w1a_ref[...], b1a_ref[...], w2a_ref[...],
                b2a_ref[...], g1_ref[...], woa_ref[...], boa_ref[...])
    r2 = branch(u2_ref[...], w1b_ref[...], b1b_ref[...], w2b_ref[...],
                b2b_ref[...], g2_ref[...], wob_ref[...], bob_ref[...])

    # layer_3 IEBlock on concat([r1, r2]) without an in-kernel concat:
    # W1 is split into the halves acting on r1 / r2.
    h3 = leaky(dot(r1, w3t_ref[...]) + dot(r2, w3b_ref[...]) + b13_ref[...])
    h3 = dot(h3, w23_ref[...]) + b23_ref[...]          # (B*N, hid3//4)
    z3 = dot(a3_ref[...], h3) + bc3_ref[...]           # block-diag (I + Wc3)
    y3 = dot(z3, wo3_ref[...]) + bo3_ref[...]          # (B*N, P)

    o_ref[...] = y3 + hw


# ----------------------------- model forward ------------------------------
def lightts_forward(x, params):
    """x: (B, T, N) float32 -> (B, pred_len, N)  (forecast path)."""
    Bt, T, N = x.shape

    # --- layout plumbing (tiny, done once in the wrapper, not per grid step) ---
    xt = jnp.transpose(x, (0, 2, 1)).reshape(Bt * N, T)            # (B*N, T)
    u1 = xt.reshape(Bt * N * NUM_CHUNKS, CHUNK)                    # continuous sampling
    u2 = jnp.swapaxes(xt.reshape(Bt * N, CHUNK, NUM_CHUNKS), 1, 2
                      ).reshape(Bt * N * NUM_CHUNKS, CHUNK)        # interval sampling

    # --- refold IEBlock permutes + chunk_proj into row-major 2-D matmuls ---
    def branch_params(L, cp_w, cp_b):
        cpw = cp_w[0]                                  # (nc,)
        cpb = cp_b[0]                                  # scalar
        g = cpw + cpw @ L['wc']                        # cp_w @ (I + Wc)
        c = cpw @ L['bc']                              # scalar
        s_cp = jnp.sum(cpw)
        woT = L['wo'].T                                # (hid//4, out_dim)
        bo_full = c * jnp.sum(woT, axis=0) + s_cp * L['bo'] + cpb
        G = jnp.kron(jnp.eye(Bt * N, dtype=x.dtype), g[None, :])   # (B*N, B*N*nc)
        return (L['w1'].T, L['b1'].reshape(1, -1),
                L['w2'].T, L['b2'].reshape(1, -1),
                G, woT, bo_full.reshape(1, -1))

    br1 = branch_params(params['l1'], params['cp1_w'], params['cp1_b'])
    br2 = branch_params(params['l2'], params['cp2_w'], params['cp2_b'])

    L3 = params['l3']
    w13T = L3['w1'].T                                              # (hid3, hid3)
    a3 = jnp.kron(jnp.eye(Bt, dtype=x.dtype),
                  jnp.eye(N, dtype=x.dtype) + L3['wc'])            # (B*N, B*N)
    bc3 = jnp.tile(L3['bc'], Bt).reshape(Bt * N, 1)                # (B*N, 1)
    l3_args = (w13T[:D_MODEL // 4], w13T[D_MODEL // 4:],
               L3['b1'].reshape(1, -1), L3['w2'].T, L3['b2'].reshape(1, -1),
               a3, bc3, L3['wo'].T, L3['bo'].reshape(1, -1))

    out_flat = pl.pallas_call(
        _fused_kernel,
        out_shape=jax.ShapeDtypeStruct((Bt * N, PRED_LEN), jnp.float32),
    )(xt, u1, u2,
      params['ar_w'].T, params['ar_b'].reshape(1, -1),
      *br1, *br2, *l3_args)

    out = jnp.transpose(out_flat.reshape(Bt, N, PRED_LEN), (0, 2, 1))
    return out[:, -PRED_LEN:, :]


# --------------------------- pure-JAX reference ----------------------------
def _lin_ref(x, w, b):
    return x @ w.T + b


def _ieblock_ref(x, p):
    t = jnp.transpose(x, (0, 2, 1))
    h = _lin_ref(t, p['w1'], p['b1'])
    h = jnp.where(h > 0, h, 0.01 * h)
    h = _lin_ref(h, p['w2'], p['b2'])
    ht = jnp.transpose(h, (0, 2, 1))
    z = ht + _lin_ref(ht, p['wc'], p['bc'])
    y = _lin_ref(jnp.transpose(z, (0, 2, 1)), p['wo'], p['bo'])
    return jnp.transpose(y, (0, 2, 1))


def lightts_ref(x, params):
    Bt, T, N = x.shape
    hw = jnp.transpose(_lin_ref(jnp.transpose(x, (0, 2, 1)),
                                params['ar_w'], params['ar_b']), (0, 2, 1))
    x1 = jnp.transpose(x.reshape(Bt, NUM_CHUNKS, CHUNK, N),
                       (0, 3, 2, 1)).reshape(Bt * N, CHUNK, NUM_CHUNKS)
    x1 = _lin_ref(_ieblock_ref(x1, params['l1']),
                  params['cp1_w'], params['cp1_b'])[..., 0]
    x2 = jnp.transpose(x.reshape(Bt, CHUNK, NUM_CHUNKS, N),
                       (0, 3, 1, 2)).reshape(Bt * N, CHUNK, NUM_CHUNKS)
    x2 = _lin_ref(_ieblock_ref(x2, params['l2']),
                  params['cp2_w'], params['cp2_b'])[..., 0]
    x3 = jnp.transpose(jnp.concatenate([x1, x2], -1).reshape(Bt, N, -1),
                       (0, 2, 1))
    out = _ieblock_ref(x3, params['l3']) + hw
    return out[:, -PRED_LEN:, :]


# ----------------------------- param init ----------------------------------
def _init_linear(key, out_dim, in_dim):
    k1, k2 = jax.random.split(key)
    bound = 1.0 / float(in_dim) ** 0.5
    w = jax.random.uniform(k1, (out_dim, in_dim), jnp.float32, -bound, bound)
    b = jax.random.uniform(k2, (out_dim,), jnp.float32, -bound, bound)
    return w, b


def _init_ieblock(key, input_dim, hid_dim, output_dim, num_node):
    ks = jax.random.split(key, 4)
    w1, b1 = _init_linear(ks[0], hid_dim, input_dim)
    w2, b2 = _init_linear(ks[1], hid_dim // 4, hid_dim)
    _, bc = _init_linear(ks[2], num_node, num_node)
    wc = jnp.eye(num_node, dtype=jnp.float32)      # torch.nn.init.eye_
    wo, bo = _init_linear(ks[3], output_dim, hid_dim // 4)
    return dict(w1=w1, b1=b1, w2=w2, b2=b2, wc=wc, bc=bc, wo=wo, bo=bo)


def init_params(key):
    ks = jax.random.split(key, 6)
    ar_w, ar_b = _init_linear(ks[0], PRED_LEN, SEQ_LEN)
    cp1_w, cp1_b = _init_linear(ks[1], 1, NUM_CHUNKS)
    cp2_w, cp2_b = _init_linear(ks[2], 1, NUM_CHUNKS)
    return dict(
        ar_w=ar_w, ar_b=ar_b,
        cp1_w=cp1_w, cp1_b=cp1_b,
        cp2_w=cp2_w, cp2_b=cp2_b,
        l1=_init_ieblock(ks[3], CHUNK, HID1, D_MODEL // 4, NUM_CHUNKS),
        l2=_init_ieblock(ks[4], CHUNK, HID1, D_MODEL // 4, NUM_CHUNKS),
        l3=_init_ieblock(ks[5], HID3, HID3, PRED_LEN, ENC_IN),
    )


# --------------------------------- main -------------------------------------
if __name__ == "__main__":
    key = jax.random.PRNGKey(0)
    kp, kx = jax.random.split(key)
    params = init_params(kp)
    x_enc = jax.random.normal(kx, (B, SEQ_LEN, ENC_IN), jnp.float32)

    out = jax.jit(lightts_forward)(x_enc, params)
    out = jax.block_until_ready(out)

    ref = lightts_ref(x_enc, params)
    assert out.shape == (B, PRED_LEN, ENC_IN), out.shape
    assert jnp.allclose(out, ref, atol=1e-4, rtol=1e-4), \
        float(jnp.max(jnp.abs(out - ref)))

    print("KERNEL_OK")
</pallas_src>

<mosaic_0001>
module attributes {stable_mosaic.version = 11 : i64} {
  func.func @_fused_kernel(%arg0: memref<8x16xf32, #tpu.memory_space<vmem>>, %arg1: memref<16x8xf32, #tpu.memory_space<vmem>>, %arg2: memref<16x8xf32, #tpu.memory_space<vmem>>, %arg3: memref<16x8xf32, #tpu.memory_space<vmem>>, %arg4: memref<1x8xf32, #tpu.memory_space<vmem>>, %arg5: memref<8x8xf32, #tpu.memory_space<vmem>>, %arg6: memref<1x8xf32, #tpu.memory_space<vmem>>, %arg7: memref<8x2xf32, #tpu.memory_space<vmem>>, %arg8: memref<1x2xf32, #tpu.memory_space<vmem>>, %arg9: memref<8x16xf32, #tpu.memory_space<vmem>>, %arg10: memref<2x8xf32, #tpu.memory_space<vmem>>, %arg11: memref<1x8xf32, #tpu.memory_space<vmem>>, %arg12: memref<8x8xf32, #tpu.memory_space<vmem>>, %arg13: memref<1x8xf32, #tpu.memory_space<vmem>>, %arg14: memref<8x2xf32, #tpu.memory_space<vmem>>, %arg15: memref<1x2xf32, #tpu.memory_space<vmem>>, %arg16: memref<8x16xf32, #tpu.memory_space<vmem>>, %arg17: memref<2x8xf32, #tpu.memory_space<vmem>>, %arg18: memref<1x8xf32, #tpu.memory_space<vmem>>, %arg19: memref<8x16xf32, #tpu.memory_space<vmem>>, %arg20: memref<8x16xf32, #tpu.memory_space<vmem>>, %arg21: memref<1x16xf32, #tpu.memory_space<vmem>>, %arg22: memref<16x4xf32, #tpu.memory_space<vmem>>, %arg23: memref<1x4xf32, #tpu.memory_space<vmem>>, %arg24: memref<8x8xf32, #tpu.memory_space<vmem>>, %arg25: memref<8x1xf32, #tpu.memory_space<vmem>>, %arg26: memref<4x8xf32, #tpu.memory_space<vmem>>, %arg27: memref<1x8xf32, #tpu.memory_space<vmem>>, %arg28: memref<8x8xf32, #tpu.memory_space<vmem>>) attributes {dimension_semantics = [], scalar_prefetch = 0 : i64, scratch_operands = 0 : i64, tpu.core_type = #tpu.core_type<tc>} {
    %c0 = arith.constant 0 : index
    %c0_0 = arith.constant 0 : index
    %0 = vector.load %arg0[%c0, %c0_0] : memref<8x16xf32, #tpu.memory_space<vmem>>, vector<8x16xf32>
    %c0_1 = arith.constant 0 : index
    %c0_2 = arith.constant 0 : index
    %1 = vector.load %arg3[%c0_1, %c0_2] : memref<16x8xf32, #tpu.memory_space<vmem>>, vector<16x8xf32>
    %cst = arith.constant dense<0.000000e+00> : vector<8x8xf32>
    %2 = tpu.matmul %0, %1, %cst {dimension_numbers = #tpu.dot_dimension_numbers<[1], [0], [0], [1], [0, 0, 1, 1], [], []>} : vector<8x16xf32>, vector<16x8xf32>, vector<8x8xf32> -> vector<8x8xf32>
    %c0_3 = arith.constant 0 : index
    %c0_4 = arith.constant 0 : index
    %3 = vector.load %arg4[%c0_3, %c0_4] : memref<1x8xf32, #tpu.memory_space<vmem>>, vector<1x8xf32>
    %4 = vector.broadcast %3 : vector<1x8xf32> to vector<8x8xf32>
    %5 = arith.addf %2, %4 : vector<8x8xf32>
    %c0_5 = arith.constant 0 : index
    %c0_6 = arith.constant 0 : index
    %6 = vector.load %arg1[%c0_5, %c0_6] : memref<16x8xf32, #tpu.memory_space<vmem>>, vector<16x8xf32>
    %c0_7 = arith.constant 0 : index
    %c0_8 = arith.constant 0 : index
    %7 = vector.load %arg5[%c0_7, %c0_8] : memref<8x8xf32, #tpu.memory_space<vmem>>, vector<8x8xf32>
    %c0_9 = arith.constant 0 : index
    %c0_10 = arith.constant 0 : index
    %8 = vector.load %arg6[%c0_9, %c0_10] : memref<1x8xf32, #tpu.memory_space<vmem>>, vector<1x8xf32>
    %c0_11 = arith.constant 0 : index
    %c0_12 = arith.constant 0 : index
    %9 = vector.load %arg7[%c0_11, %c0_12] : memref<8x2xf32, #tpu.memory_space<vmem>>, vector<8x2xf32>
    %c0_13 = arith.constant 0 : index
    %c0_14 = arith.constant 0 : index
    %10 = vector.load %arg8[%c0_13, %c0_14] : memref<1x2xf32, #tpu.memory_space<vmem>>, vector<1x2xf32>
    %c0_15 = arith.constant 0 : index
    %c0_16 = arith.constant 0 : index
    %11 = vector.load %arg9[%c0_15, %c0_16] : memref<8x16xf32, #tpu.memory_space<vmem>>, vector<8x16xf32>
    %c0_17 = arith.constant 0 : index
    %c0_18 = arith.constant 0 : index
    %12 = vector.load %arg10[%c0_17, %c0_18] : memref<2x8xf32, #tpu.memory_space<vmem>>, vector<2x8xf32>
    %c0_19 = arith.constant 0 : index
    %c0_20 = arith.constant 0 : index
    %13 = vector.load %arg11[%c0_19, %c0_20] : memref<1x8xf32, #tpu.memory_space<vmem>>, vector<1x8xf32>
    %cst_21 = arith.constant dense<0.000000e+00> : vector<16x8xf32>
    %14 = tpu.matmul %6, %7, %cst_21 {dimension_numbers = #tpu.dot_dimension_numbers<[1], [0], [0], [1], [0, 0, 1, 1], [], []>} : vector<16x8xf32>, vector<8x8xf32>, vector<16x8xf32> -> vector<16x8xf32>
    %15 = vector.broadcast %8 : vector<1x8xf32> to vector<16x8xf32>
    %16 = arith.addf %14, %15 : vector<16x8xf32>
    %cst_22 = arith.constant 0.000000e+00 : f32
    %17 = vector.broadcast %cst_22 : f32 to vector<16x8xf32>
    %18 = arith.cmpf ogt, %16, %17 : vector<16x8xf32>
    %cst_23 = arith.constant 0.00999999977 : f32
    %19 = vector.broadcast %cst_23 : f32 to vector<16x8xf32>
    %20 = arith.mulf %19, %16 : vector<16x8xf32>
    %21 = arith.select %18, %16, %20 : vector<16x8xi1>, vector<16x8xf32>
    %cst_24 = arith.constant dense<0.000000e+00> : vector<16x2xf32>
    %22 = tpu.matmul %21, %9, %cst_24 {dimension_numbers = #tpu.dot_dimension_numbers<[1], [0], [0], [1], [0, 0, 1, 1], [], []>} : vector<16x8xf32>, vector<8x2xf32>, vector<16x2xf32> -> vector<16x2xf32>
    %23 = vector.broadcast %10 : vector<1x2xf32> to vector<16x2xf32>
    %24 = arith.addf %22, %23 : vector<16x2xf32>
    %cst_25 = arith.constant dense<0.000000e+00> : vector<8x2xf32>
    %25 = tpu.matmul %11, %24, %cst_25 {dimension_numbers = #tpu.dot_dimension_numbers<[1], [0], [0], [1], [0, 0, 1, 1], [], []>} : vector<8x16xf32>, vector<16x2xf32>, vector<8x2xf32> -> vector<8x2xf32>
    %cst_26 = arith.constant dense<0.000000e+00> : vector<8x8xf32>
    %26 = tpu.matmul %25, %12, %cst_26 {dimension_numbers = #tpu.dot_dimension_numbers<[1], [0], [0], [1], [0, 0, 1, 1], [], []>} : vector<8x2xf32>, vector<2x8xf32>, vector<8x8xf32> -> vector<8x8xf32>
    %27 = vector.broadcast %13 : vector<1x8xf32> to vector<8x8xf32>
    %28 = arith.addf %26, %27 : vector<8x8xf32>
    %c0_27 = arith.constant 0 : index
    %c0_28 = arith.constant 0 : index
    %29 = vector.load %arg2[%c0_27, %c0_28] : memref<16x8xf32, #tpu.memory_space<vmem>>, vector<16x8xf32>
    %c0_29 = arith.constant 0 : index
    %c0_30 = arith.constant 0 : index
    %30 = vector.load %arg12[%c0_29, %c0_30] : memref<8x8xf32, #tpu.memory_space<vmem>>, vector<8x8xf32>
    %c0_31 = arith.constant 0 : index
    %c0_32 = arith.constant 0 : index
    %31 = vector.load %arg13[%c0_31, %c0_32] : memref<1x8xf32, #tpu.memory_space<vmem>>, vector<1x8xf32>
    %c0_33 = arith.constant 0 : index
    %c0_34 = arith.constant 0 : index
    %32 = vector.load %arg14[%c0_33, %c0_34] : memref<8x2xf32, #tpu.memory_space<vmem>>, vector<8x2xf32>
    %c0_35 = arith.constant 0 : index
    %c0_36 = arith.constant 0 : index
    %33 = vector.load %arg15[%c0_35, %c0_36] : memref<1x2xf32, #tpu.memory_space<vmem>>, vector<1x2xf32>
    %c0_37 = arith.constant 0 : index
    %c0_38 = arith.constant 0 : index
    %34 = vector.load %arg16[%c0_37, %c0_38] : memref<8x16xf32, #tpu.memory_space<vmem>>, vector<8x16xf32>
    %c0_39 = arith.constant 0 : index
    %c0_40 = arith.constant 0 : index
    %35 = vector.load %arg17[%c0_39, %c0_40] : memref<2x8xf32, #tpu.memory_space<vmem>>, vector<2x8xf32>
    %c0_41 = arith.constant 0 : index
    %c0_42 = arith.constant 0 : index
    %36 = vector.load %arg18[%c0_41, %c0_42] : memref<1x8xf32, #tpu.memory_space<vmem>>, vector<1x8xf32>
    %cst_43 = arith.constant dense<0.000000e+00> : vector<16x8xf32>
    %37 = tpu.matmul %29, %30, %cst_43 {dimension_numbers = #tpu.dot_dimension_numbers<[1], [0], [0], [1], [0, 0, 1, 1], [], []>} : vector<16x8xf32>, vector<8x8xf32>, vector<16x8xf32> -> vector<16x8xf32>
    %38 = vector.broadcast %31 : vector<1x8xf32> to vector<16x8xf32>
    %39 = arith.addf %37, %38 : vector<16x8xf32>
    %cst_44 = arith.constant 0.000000e+00 : f32
    %40 = vector.broadcast %cst_44 : f32 to vector<16x8xf32>
    %41 = arith.cmpf ogt, %39, %40 : vector<16x8xf32>
    %cst_45 = arith.constant 0.00999999977 : f32
    %42 = vector.broadcast %cst_45 : f32 to vector<16x8xf32>
    %43 = arith.mulf %42, %39 : vector<16x8xf32>
    %44 = arith.select %41, %39, %43 : vector<16x8xi1>, vector<16x8xf32>
    %cst_46 = arith.constant dense<0.000000e+00> : vector<16x2xf32>
    %45 = tpu.matmul %44, %32, %cst_46 {dimension_numbers = #tpu.dot_dimension_numbers<[1], [0], [0], [1], [0, 0, 1, 1], [], []>} : vector<16x8xf32>, vector<8x2xf32>, vector<16x2xf32> -> vector<16x2xf32>
    %46 = vector.broadcast %33 : vector<1x2xf32> to vector<16x2xf32>
    %47 = arith.addf %45, %46 : vector<16x2xf32>
    %cst_47 = arith.constant dense<0.000000e+00> : vector<8x2xf32>
    %48 = tpu.matmul %34, %47, %cst_47 {dimension_numbers = #tpu.dot_dimension_numbers<[1], [0], [0], [1], [0, 0, 1, 1], [], []>} : vector<8x16xf32>, vector<16x2xf32>, vector<8x2xf32> -> vector<8x2xf32>
    %cst_48 = arith.constant dense<0.000000e+00> : vector<8x8xf32>
    %49 = tpu.matmul %48, %35, %cst_48 {dimension_numbers = #tpu.dot_dimension_numbers<[1], [0], [0], [1], [0, 0, 1, 1], [], []>} : vector<8x2xf32>, vector<2x8xf32>, vector<8x8xf32> -> vector<8x8xf32>
    %50 = vector.broadcast %36 : vector<1x8xf32> to vector<8x8xf32>
    %51 = arith.addf %49, %50 : vector<8x8xf32>
    %c0_49 = arith.constant 0 : index
    %c0_50 = arith.constant 0 : index
    %52 = vector.load %arg19[%c0_49, %c0_50] : memref<8x16xf32, #tpu.memory_space<vmem>>, vector<8x16xf32>
    %cst_51 = arith.constant dense<0.000000e+00> : vector<8x16xf32>
    %53 = tpu.matmul %28, %52, %cst_51 {dimension_numbers = #tpu.dot_dimension_numbers<[1], [0], [0], [1], [0, 0, 1, 1], [], []>} : vector<8x8xf32>, vector<8x16xf32>, vector<8x16xf32> -> vector<8x16xf32>
    %c0_52 = arith.constant 0 : index
    %c0_53 = arith.constant 0 : index
    %54 = vector.load %arg20[%c0_52, %c0_53] : memref<8x16xf32, #tpu.memory_space<vmem>>, vector<8x16xf32>
    %cst_54 = arith.constant dense<0.000000e+00> : vector<8x16xf32>
    %55 = tpu.matmul %51, %54, %cst_54 {dimension_numbers = #tpu.dot_dimension_numbers<[1], [0], [0], [1], [0, 0, 1, 1], [], []>} : vector<8x8xf32>, vector<8x16xf32>, vector<8x16xf32> -> vector<8x16xf32>
    %56 = arith.addf %53, %55 : vector<8x16xf32>
    %c0_55 = arith.constant 0 : index
    %c0_56 = arith.constant 0 : index
    %57 = vector.load %arg21[%c0_55, %c0_56] : memref<1x16xf32, #tpu.memory_space<vmem>>, vector<1x16xf32>
    %58 = vector.broadcast %57 : vector<1x16xf32> to vector<8x16xf32>
    %59 = arith.addf %56, %58 : vector<8x16xf32>
    %cst_57 = arith.constant 0.000000e+00 : f32
    %60 = vector.broadcast %cst_57 : f32 to vector<8x16xf32>
    %61 = arith.cmpf ogt, %59, %60 : vector<8x16xf32>
    %cst_58 = arith.constant 0.00999999977 : f32
    %62 = vector.broadcast %cst_58 : f32 to vector<8x16xf32>
    %63 = arith.mulf %62, %59 : vector<8x16xf32>
    %64 = arith.select %61, %59, %63 : vector<8x16xi1>, vector<8x16xf32>
    %c0_59 = arith.constant 0 : index
    %c0_60 = arith.constant 0 : index
    %65 = vector.load %arg22[%c0_59, %c0_60] : memref<16x4xf32, #tpu.memory_space<vmem>>, vector<16x4xf32>
    %cst_61 = arith.constant dense<0.000000e+00> : vector<8x4xf32>
    %66 = tpu.matmul %64, %65, %cst_61 {dimension_numbers = #tpu.dot_dimension_numbers<[1], [0], [0], [1], [0, 0, 1, 1], [], []>} : vector<8x16xf32>, vector<16x4xf32>, vector<8x4xf32> -> vector<8x4xf32>
    %c0_62 = arith.constant 0 : index
    %c0_63 = arith.constant 0 : index
    %67 = vector.load %arg23[%c0_62, %c0_63] : memref<1x4xf32, #tpu.memory_space<vmem>>, vector<1x4xf32>
    %68 = vector.broadcast %67 : vector<1x4xf32> to vector<8x4xf32>
    %69 = arith.addf %66, %68 : vector<8x4xf32>
    %c0_64 = arith.constant 0 : index
    %c0_65 = arith.constant 0 : index
    %70 = vector.load %arg24[%c0_64, %c0_65] : memref<8x8xf32, #tpu.memory_space<vmem>>, vector<8x8xf32>
    %cst_66 = arith.constant dense<0.000000e+00> : vector<8x4xf32>
    %71 = tpu.matmul %70, %69, %cst_66 {dimension_numbers = #tpu.dot_dimension_numbers<[1], [0], [0], [1], [0, 0, 1, 1], [], []>} : vector<8x8xf32>, vector<8x4xf32>, vector<8x4xf32> -> vector<8x4xf32>
    %c0_67 = arith.constant 0 : index
    %c0_68 = arith.constant 0 : index
    %72 = vector.load %arg25[%c0_67, %c0_68] : memref<8x1xf32, #tpu.memory_space<vmem>>, vector<8x1xf32>
    %73 = vector.broadcast %72 : vector<8x1xf32> to vector<8x4xf32>
    %74 = arith.addf %71, %73 : vector<8x4xf32>
    %c0_69 = arith.constant 0 : index
    %c0_70 = arith.constant 0 : index
    %75 = vector.load %arg26[%c0_69, %c0_70] : memref<4x8xf32, #tpu.memory_space<vmem>>, vector<4x8xf32>
    %cst_71 = arith.constant dense<0.000000e+00> : vector<8x8xf32>
    %76 = tpu.matmul %74, %75, %cst_71 {dimension_numbers = #tpu.dot_dimension_numbers<[1], [0], [0], [1], [0, 0, 1, 1], [], []>} : vector<8x4xf32>, vector<4x8xf32>, vector<8x8xf32> -> vector<8x8xf32>
    %c0_72 = arith.constant 0 : index
    %c0_73 = arith.constant 0 : index
    %77 = vector.load %arg27[%c0_72, %c0_73] : memref<1x8xf32, #tpu.memory_space<vmem>>, vector<1x8xf32>
    %78 = vector.broadcast %77 : vector<1x8xf32> to vector<8x8xf32>
    %79 = arith.addf %76, %78 : vector<8x8xf32>
    %80 = arith.addf %79, %5 : vector<8x8xf32>
    %c0_74 = arith.constant 0 : index
    %c0_75 = arith.constant 0 : index
    %81 = vector.load %arg28[%c0_74, %c0_75] : memref<8x8xf32, #tpu.memory_space<vmem>>, vector<8x8xf32>
    tpu.vector_store %arg28[%c0_74, %c0_75], %80 {strides = array<i32>} : memref<8x8xf32, #tpu.memory_space<vmem>>, vector<8x8xf32>,
    return
  }
}

</mosaic_0001>

<bundles_post_ra>
// kernel: tile.8
= control target key start
LH: loop header
LB: loop body
LE: loop exit
PB: predicated region body
PF: predicated region fallthrough
CT: control target
= control target key end

     0   :  { %s22_s0 = inlined_call_operand.vmem [shape: f32[4], index: 0, kind: input, shape index: {}]   ;;  %s23_s1 = inlined_call_operand.vmem [shape: f32[2,4], index: 1, kind: output, shape index: {}]  }
   0x1   :  { %v4_v0 = vld [vmem:[%s22_s0] ss:$0 sm:$0xff] }
   0x2   :  { %5 = vst [vmem:[%s23_s1] sm:$0x3] %v4_v0 }

// kernel: tile.0
= control target key start
LH: loop header
LB: loop body
LE: loop exit
PB: predicated region body
PF: predicated region fallthrough
CT: control target
= control target key end

     0   :  { %s34_s8 = smov 125   ;;  %vm7_vm0 = vcmask 7168   ;;  %s35_s11 = smov 126   ;;  %s61_s0 = inlined_call_operand.vmem [shape: f32[2,4], index: 0, kind: input, shape index: {}]   ;;  %s62_s1 = inlined_call_operand.vmem [shape: f32[8,1], index: 1, kind: output, shape index: {}]  }
   0x1   :  { %v4_v0 = vld [vmem:[%s61_s0] sm:$0x3]  ;;  %s33_s0 = smov 127  }
   0x2   :  { %5 = vst [vmem:[#allocation0] sm:$0x3] %v4_v0 }
   0x9   :  { %v9_v1 = vld [vmem:[#allocation0] sm:$0x3]  }
   0xa   :  { %v21_v2 = vld [vmem:[#allocation0] sm:$0x3]   ;;  %10 = vrot.lane.b32.xlu0 %v9_v1, %s33_s0 }
   0xb   :  { %22 = vrot.lane.b32.xlu1 %v21_v2, %s34_s8  ;;  %v6_v3 = vld [vmem:[#allocation0] sm:$0x3]  }
   0xc   :  { %v15_v4 = vld [vmem:[#allocation0] sm:$0x3]   ;;  %8 = vst.msk [vmem:[%s62_s1] ss:$4 sm:$0x3] %vm7_vm0, %v6_v3  }
   0xe   :  { %16 = vrot.lane.b32.xlu0 %v15_v4, %s35_s11 }
  0x7c   :  { %v11_v5 = vpop.permute.xlu0 %10  }
  0x7d   :  { %v23_v6 = vpop.permute.xlu1 %22   ;;  %27 = vst.msk [vmem:[%s62_s1 + $0x1] ss:$4 sm:$0x3] %vm7_vm0, %v11_v5  }
  0x7e   :  { %29 = vst.msk [vmem:[%s62_s1 + $0x3] ss:$4 sm:$0x3] %vm7_vm0, %v23_v6  }
  0x80   :  { %v17_v7 = vpop.permute.xlu0 %16  }
  0x81   :  { %28 = vst.msk [vmem:[%s62_s1 + $0x2] ss:$4 sm:$0x3] %vm7_vm0, %v17_v7  }

// kernel: lightts_forward.1
= control target key start
LH: loop header
LB: loop body
LE: loop exit
PB: predicated region body
PF: predicated region fallthrough
CT: control target
= control target key end

     0   :  { %s1787_s0 = inlined_call_operand.vmem [shape: f32[8,16], index: 0, kind: input, shape index: {}]   ;;  %s1788_s1 = inlined_call_operand.vmem [shape: f32[16,8], index: 1, kind: input, shape index: {}]   ;;  %s1789_s2 = inlined_call_operand.vmem [shape: f32[16,8], index: 2, kind: input, shape index: {}]   ;;  %s1790_s3 = inlined_call_operand.vmem [shape: f32[16,8], index: 3, kind: input, shape index: {}]   ;;  %s1791_s4 = inlined_call_operand.vmem [shape: f32[1,8], index: 4, kind: input, shape index: {}]   ;;  %s1792_s5 = inlined_call_operand.vmem [shape: f32[8,8], index: 5, kind: input, shape index: {}]   ;;  %s1793_s6 = inlined_call_operand.vmem [shape: f32[1,8], index: 6, kind: input, shape index: {}]   ;;  %s1794_s7 = inlined_call_operand.vmem [shape: f32[8,2], index: 7, kind: input, shape index: {}]   ;;  %s1795_s8 = inlined_call_operand.vmem [shape: f32[1,2], index: 8, kind: input, shape index: {}]   ;;  %s1796_s9 = inlined_call_operand.vmem [shape: f32[8,16], index: 9, kind: input, shape index: {}]   ;;  %s1797_s10 = inlined_call_operand.vmem [shape: f32[2,8], index: 10, kind: input, shape index: {}]   ;;  %s1798_s11 = inlined_call_operand.vmem [shape: f32[1,8], index: 11, kind: input, shape index: {}]   ;;  %s1799_s12 = inlined_call_operand.vmem [shape: f32[8,8], index: 12, kind: input, shape index: {}]   ;;  %s1800_s13 = inlined_call_operand.vmem [shape: f32[1,8], index: 13, kind: input, shape index: {}]   ;;  %s1801_s14 = inlined_call_operand.vmem [shape: f32[8,2], index: 14, kind: input, shape index: {}]   ;;  %s1802_s15 = inlined_call_operand.vmem [shape: f32[1,2], index: 15, kind: input, shape index: {}]   ;;  %s1803_s16 = inlined_call_operand.vmem [shape: f32[8,16], index: 16, kind: input, shape index: {}]   ;;  %s1804_s17 = inlined_call_operand.vmem [shape: f32[2,8], index: 17, kind: input, shape index: {}]   ;;  %s1805_s18 = inlined_call_operand.vmem [shape: f32[1,8], index: 18, kind: input, shape index: {}]   ;;  %s1806_s19 = inlined_call_operand.vmem [shape: f32[8,16], index: 19, kind: input, shape index: {}]   ;;  %s1807_s20 = inlined_call_operand.vmem [shape: f32[8,16], index: 20, kind: input, shape index: {}]   ;;  %s1808_s21 = inlined_call_operand.vmem [shape: f32[1,16], index: 21, kind: input, shape index: {}]   ;;  %s1809_s22 = inlined_call_operand.vmem [shape: f32[16,4], index: 22, kind: input, shape index: {}]   ;;  %s1810_s23 = inlined_call_operand.vmem [shape: f32[1,4], index: 23, kind: input, shape index: {}]   ;;  %s1811_s24 = inlined_call_operand.vmem [shape: f32[8,8], index: 24, kind: input, shape index: {}]   ;;  %s1812_s25 = inlined_call_operand.vmem [shape: f32[8,1], index: 25, kind: input, shape index: {}]   ;;  %s1813_s26 = inlined_call_operand.vmem [shape: f32[4,8], index: 26, kind: input, shape index: {}]   ;;  %s1814_s27 = inlined_call_operand.vmem [shape: f32[1,8], index: 27, kind: input, shape index: {}]   ;;  %s1815_s28 = inlined_call_operand.hbm [shape: f32[8,8], index: 28, kind: output, shape index: {}]  }
   0x1   :  { %1819 = sst [smem:[#allocation5_spill]] %s1787_s0 }
   0x2   :  { %1820 = sst [smem:[#allocation6_spill]] %s1788_s1 }
   0x3   :  { %1821 = sst [smem:[#allocation7_spill]] %s1789_s2 }
   0x4   :  { %1822 = sst [smem:[#allocation8_spill]] %s1790_s3 }
   0x5   :  { %1823 = sst [smem:[#allocation9_spill]] %s1791_s4 }
   0x6   :  { %1824 = sst [smem:[#allocation10_spill]] %s1792_s5 }
   0x7   :  { %1825 = sst [smem:[#allocation11_spill]] %s1793_s6 }
   0x8   :  { %1826 = sst [smem:[#allocation12_spill]] %s1794_s7 }
   0x9   :  { %1827 = sst [smem:[#allocation13_spill]] %s1795_s8 }
   0xa   :  { %1828 = sst [smem:[#allocation14_spill]] %s1796_s9 }
   0xb   :  { %1829 = sst [smem:[#allocation15_spill]] %s1797_s10 }
   0xc   :  { %1830 = sst [smem:[#allocation16_spill]] %s1798_s11 }
   0xd   :  { %1831 = sst [smem:[#allocation17_spill]] %s1799_s12 }
   0xe   :  { %1832 = sst [smem:[#allocation18_spill]] %s1810_s23 }
   0xf   :  { %s1833_s9 = sld [smem:[#allocation10_spill]]  ;;  %s1834_s23 = sld [smem:[#allocation6_spill]]  ;;  %vm189_vm0 = vcmask 64512  }
  0x15   :  { %v176_v0 = vld [vmem:[%s1833_s9] sm:$0xff]  ;;  %v175_v2 = vld [vmem:[%s1834_s23 + $0x8] sm:$0xff] }
  0x16   :  { %v174_v1 = vld [vmem:[%s1834_s23] sm:$0xff]  ;;  %1362 = vmatprep.subr.mxu1 %v176_v0 }
  0x17   :  { %1364 = vmatprep.mubr.msk.f32.mxu1 %vm189_vm0, %v174_v1 }
  0x18   :  { %33 = vsyncpa [#allocation3], 0  ;;  %1363 = vmatpush3.msra.mxu1 %v176_v0  ;;  %s1835_s29 = sld [smem:[#allocation12_spill]]  ;;  %s1836_s12 = sld [smem:[#allocation11_spill]]  ;;  %v1479_v16 = vmov 0.0|0.0   ;;  %vm1480_vm3 = vmmov 0  }
  0x19   :  { %1365 = vmatmul.mubr.msk.f32.vlgmr.msra.gmra.mrb[0].mxu1 %vm189_vm0, %v175_v2  ;;  %s1837_s4 = sld [smem:[#allocation8_spill]]  ;;  %1433 = vmatprep.subr.bf16.mxu0 %v1479_v16  ;;  %v1481_v17 = vmov 0.0   ;;  %s1838_s3 = sld [smem:[#allocation5_spill]]  ;;  %vm100_vm4 = vcmask 130048   ;;  %vm447_vm5 = vcmask 1041408   ;;  %v525_v30 = vld [vmem:[%s1801_s14] sm:$0xff] }
  0x1a   :  { %1359 = vmatprep.mubr.msk.f32.mxu0 %vm1480_vm3, %v1481_v17  ;;  %s1839_s0 = sld [smem:[#allocation13_spill]]  ;;  %s1840_s2 = sld [smem:[#allocation17_spill]]  ;;  %vm443_vm6 = vcmask 15360   ;;  %v1300_v33 = vld [vmem:[%s1800_s13] ss:$0 sm:$0xff]  ;;  %v1025_v1 = vld [vmem:[%s1809_s22 + $0x8] sm:$0xff] }
  0x1b   :  { %s1841_s23 = sld [smem:[#allocation14_spill]]  ;;  %s1842_s8 = sld [smem:[#allocation7_spill]]  ;;  %v1303_v44 = vld [vmem:[%s1802_s15] ss:$0 sm:$0xff]  ;;  %vm1198_vm10 = vcmask 1043456   ;;  %vm1194_vm11 = vcmask 31744  }
  0x1c   :  { %s1843_s6 = sld [smem:[#allocation15_spill]]  ;;  %v527_v50 = vld [vmem:[%s1803_s16] sm:$0xff]  ;;  %s1483_s1 = smov [#allocation2]  }
  0x1d   :  { %v528_v51 = vld [vmem:[%s1804_s17] sm:$0x3]  ;;  %s1280_s16 = sshll.u32 %s1483_s1, 4  ;;  %s1281_s16 = int_to_ptr.vmem [resolvable:$true] %s1280_s16 }
  0x1e   :  { %v178_v3 = vld [vmem:[%s1835_s29] sm:$0xff]  ;;  %s1845_s29 = sld [smem:[#allocation18_spill]]  ;;  %p1460_p1 = scmp.lt.s32.totalorder %s1281_s16, %s1281_s16 }
  0x1f   :  { %1367 = vmatprep.subr.mxu1 %v178_v3  ;;  %v1290_v4 = vld [vmem:[%s1836_s12] ss:$0 sm:$0xff]  ;;  %v92_v14 = vld [vmem:[%s1837_s4 + $0x8] sm:$0xff] }
  0x20   :  { %1368 = vmatpush3.msra.mxu1 %v178_v3  ;;  %v91_v13 = vld [vmem:[%s1837_s4] sm:$0xff] }
  0x21   :  { %v1434_v15 = vpack.c.bf16 %v92_v14, %v91_v13  ;;  %v90_v18 = vld [vmem:[%s1838_s3] sm:$0xff]  ;;  %1379 = vmatprep.subr.mxu1 %v1481_v17  ;;  %v522_v28 = vld [vmem:[%s1842_s8 + $0x8] sm:$0xff] }
  0x22   :  { %v1293_v19 = vld [vmem:[%s1839_s0] ss:$0 sm:$0xff] }
  0x23   :  { %1435 = vmatpush3.bf16.msra.mxu0 %v1434_v15  ;;  %v523_v25 = vld [vmem:[%s1840_s2] sm:$0xff] }
  0x24   :  { %1436 = vmatprep.subr.bf16.mxu0 %v1479_v16  ;;  %v180_v26 = vld [vmem:[%s1841_s23] sm:$0xff]  ;;  %s1846_s23 = sld [smem:[#allocation9_spill]] }
  0x25   :  { %v521_v27 = vld [vmem:[%s1842_s8] sm:$0xff]  ;;  %s1844_s8 = sld [smem:[#allocation16_spill]] }
  0x26   :  { %1360 = vmatmul.mubr.msk.f32.vlgmr.msra.gmra.mrb[0].mxu0 %vm100_vm4, %v90_v18  ;;  %v181_v29 = vld [vmem:[%s1843_s6] sm:$0x3] }
  0x27   :  { %1376 = vmatprep.mubr.msk.f32.mxu0 %vm1480_vm3, %v1481_v17  ;;  %v865_v52 = vld [vmem:[%s1806_s19] sm:$0xff] }
  0x28   :  { %v866_v57 = vld [vmem:[%s1807_s20] sm:$0xff] }
  0x29   :  { %v1307_v58 = vld [vmem:[%s1805_s18] ss:$0 sm:$0xff] }
  0x2a   :  { %v1024_v0 = vld [vmem:[%s1809_s22] sm:$0xff] }
  0x2b   :  { %v1297_v53 = vld [vmem:[%s1844_s8] ss:$0 sm:$0xff]  ;;  %v1443_v2 = vpack.c.bf16 %v1025_v1, %v1024_v0 }
  0xec   :  { %v1366_v5 = vpop.f32.mrb[0].mxu1 }
  0xed   :  { %v268_v6 = vadd.f32 %v1366_v5, %v1290_v4  ;;  %v262_v7 = vpop.f32.mrb[1].mxu1 }
  0xee   :  { %v263_v8 = vadd.f32 %v1290_v4, %v262_v7  ;;  %v1312_v4 = vld [vmem:[%s1808_s21] ss:$0 sm:$0xff] }
  0xef   :  { %v274_v9 = vmul.f32 0.01, %v268_v6  ;;  %vm272_vm1 = vcmp.gt.f32.partialorder %v268_v6, 0.0 }
  0xf0   :  { %vm271_vm2 = vcmp.gt.f32.partialorder %v263_v8, 0.0  ;;  %v273_v10 = vmul.f32 0.01, %v263_v8 }
  0xf1   :  { %v276_v12 = vsel %vm272_vm1, %v268_v6, %v274_v9 }
  0xf2   :  { %v275_v11 = vsel %vm271_vm2, %v263_v8, %v273_v10  ;;  %v1107_v10 = vld [vmem:[%s1812_s25] sm:$0xff] }
  0xf3   :  { %1369 = vmatprep.mubr.msk.f32.mxu1 %vm189_vm0, %v275_v11  ;;  %v1482_v11 = vmov 0  }
  0xf4   :  { %1370 = vmatmul.mubr.msk.f32.vlgmr.msra.gmra.mrb[2].mxu1 %vm189_vm0, %v276_v12  ;;  %1454 = vset.pattern.permute.xlu0 %v1482_v11  ;;  %v1313_v12 = vld [vmem:[%s1845_s29] ss:$0 sm:$0xff] }
  0xf5   :  { %1381 = vmatprep.mubr.msk.f32.mxu1 %vm1480_vm3, %v1481_v17  ;;  %1380 = vmatpush3.msk.msra.mxu1 %vm447_vm5, %v181_v29 }
  0xf6   :  { %1389 = vmatprep.subr.mxu1 %v525_v30  ;;  %1110 = vperm.xlu0 %1454, %v1107_v10  }
 0x175   :  { %v1111_v18 = vpop.permute.xlu0 %1110 }
 0x1c7   :  { %v1371_v20 = vpop.f32.mrb[2].mxu1 }
 0x1c8   :  { %v361_v21 = vadd.f32 %v1371_v20, %v1293_v19  ;;  %v355_v22 = vpop.f32.mrb[3].mxu1 }
 0x1c9   :  { %v356_v23 = vadd.f32 %v1293_v19, %v355_v22  ;;  %v1288_v22 = vld [vmem:[%s1846_s23] ss:$0 sm:$0xff] }
 0x1cb   :  { %v1437_v24 = vpack.c.bf16 %v361_v21, %v356_v23  ;;  %v1316_v23 = vld [vmem:[%s1814_s27] ss:$0 sm:$0xff] }
 0x1cd   :  { %1438 = vmatpush3.bf16.msra.mxu0 %v1437_v24  ;;  %v1445_v24 = vadd.f32 %v1316_v23, %v1288_v22 }
 0x1ce   :  { %1384 = vmatprep.subr.mxu0 %v523_v25 }
 0x1d0   :  { %1377 = vmatmul.mubr.msk.f32.vlgmr.msra.gmra.mrb[2].mxu0 %vm100_vm4, %v180_v26 }
 0x1d1   :  { %1385 = vmatpush3.msra.mxu0 %v523_v25  ;;  %1386 = vmatprep.mubr.msk.f32.mxu0 %vm189_vm0, %v521_v27 }
 0x1d2   :  { %1439 = vmatprep.subr.bf16.mxu0 %v1479_v16 }
 0x1d4   :  { %1387 = vmatmul.mubr.msk.f32.vlgmr.msra.gmra.mrb[4].mxu0 %vm189_vm0, %v522_v28 }
 0x1d5   :  { %1398 = vmatprep.mubr.msk.f32.mxu0 %vm1480_vm3, %v1481_v17 }
 0x2a3   :  { %v433_v31 = vpop.f32.mrb[2].mxu0 }
 0x2a4   :  { %v1378_v32 = vpop.f32.mrb[3].mxu0  ;;  %1382 = vmatmul.mubr.msk.f32.vlgmr.msra.gmra.mrb[4].mxu1 %vm443_vm6, %v433_v31 }
 0x2a5   :  { %1390 = vmatpush3.msra.mxu1 %v525_v30 }
 0x2a6   :  { %1401 = vmatprep.subr.mxu1 %v1481_v17 }
 0x2a7   :  { %v1388_v34 = vpop.f32.mrb[4].mxu0 }
 0x2a8   :  { %v614_v35 = vadd.f32 %v1388_v34, %v1300_v33  ;;  %v608_v36 = vpop.f32.mrb[5].mxu0 }
 0x2a9   :  { %v609_v37 = vadd.f32 %v1300_v33, %v608_v36 }
 0x2aa   :  { %v620_v38 = vmul.f32 0.01, %v614_v35  ;;  %vm618_vm7 = vcmp.gt.f32.partialorder %v614_v35, 0.0 }
 0x2ab   :  { %vm617_vm8 = vcmp.gt.f32.partialorder %v609_v37, 0.0  ;;  %v619_v39 = vmul.f32 0.01, %v609_v37 }
 0x2ac   :  { %v622_v41 = vsel %vm618_vm7, %v614_v35, %v620_v38 }
 0x2ad   :  { %v621_v40 = vsel %vm617_vm8, %v609_v37, %v619_v39 }
 0x2ae   :  { %1391 = vmatprep.mubr.msk.f32.mxu1 %vm189_vm0, %v621_v40 }
 0x2af   :  { %1392 = vmatmul.mubr.msk.f32.vlgmr.msra.gmra.mrb[6].mxu1 %vm189_vm0, %v622_v41 }
 0x2b0   :  { %1403 = vmatprep.mubr.msk.f32.mxu1 %vm1480_vm3, %v1481_v17  ;;  %1402 = vmatpush3.msk.msra.mxu1 %vm447_vm5, %v528_v51 }
 0x2b1   :  { %1411 = vmatprep.subr.mxu1 %v1481_v17 }
 0x377   :  { %v517_v42 = vpop.f32.mrb[4].mxu1 }
 0x378   :  { %v1383_v43 = vpop.f32.mrb[5].mxu1  ;;  %v518_v56 = vadd.f32 %v1297_v53, %v517_v42 }
 0x382   :  { %v1393_v45 = vpop.f32.mrb[6].mxu1 }
 0x383   :  { %v707_v46 = vadd.f32 %v1393_v45, %v1303_v44  ;;  %v701_v47 = vpop.f32.mrb[7].mxu1 }
 0x384   :  { %v702_v48 = vadd.f32 %v1303_v44, %v701_v47 }
 0x386   :  { %v1440_v49 = vpack.c.bf16 %v707_v46, %v702_v48 }
 0x388   :  { %1441 = vmatpush3.bf16.msra.mxu0 %v1440_v49 }
 0x389   :  { %1406 = vmatprep.subr.mxu0 %v1481_v17 }
 0x38b   :  { %1399 = vmatmul.mubr.msk.f32.vlgmr.msra.gmra.mrb[6].mxu0 %vm100_vm4, %v527_v50 }
 0x38c   :  { %1408 = vmatprep.mubr.msk.f32.mxu0 %vm1480_vm3, %v1481_v17  ;;  %1407 = vmatpush3.msra.mxu0 %v866_v57 }
 0x38d   :  { %1442 = vmatprep.subr.bf16.mxu0 %v1479_v16  ;;  %v1106_v16 = vld [vmem:[%s1811_s24] sm:$0xff] }
 0x45e   :  { %v779_v54 = vpop.f32.mrb[6].mxu0 }
 0x45f   :  { %v1400_v55 = vpop.f32.mrb[7].mxu0  ;;  %1404 = vmatmul.mubr.msk.f32.vlgmr.msra.gmra.mrb[8].mxu1 %vm443_vm6, %v779_v54 }
 0x460   :  { %1412 = vmatpush3.msra.mxu1 %v865_v52  ;;  %1413 = vmatprep.mubr.msk.f32.mxu1 %vm1480_vm3, %v1481_v17 }
 0x461   :  { %1423 = vmatprep.subr.mxu1 %v1481_v17 }
 0x463   :  { %1414 = vmatmul.mubr.msk.f32.vlgmr.msra.gmra.mrb[10].mxu1 %vm189_vm0, %v518_v56 }
 0x464   :  { %1425 = vmatprep.mubr.msk.f32.mxu1 %vm1480_vm3, %v1481_v17 }
 0x532   :  { %v861_v59 = vpop.f32.mrb[8].mxu1 }
 0x533   :  { %v862_v60 = vadd.f32 %v1307_v58, %v861_v59  ;;  %v1405_v61 = vpop.f32.mrb[9].mxu1 }
 0x535   :  { %1409 = vmatmul.mubr.msk.f32.vlgmr.msra.gmra.mrb[8].mxu0 %vm189_vm0, %v862_v60 }
 0x536   :  { %v1009_v62 = vpop.f32.mrb[10].mxu1  ;;  %1420 = vmatprep.mubr.msk.f32.mxu0 %vm1480_vm3, %v1481_v17  ;;  %1444 = vmatpush3.bf16.msra.mxu0 %v1443_v2 }
 0x537   :  { %v1415_v63 = vpop.f32.mrb[11].mxu1  ;;  %1428 = vmatprep.subr.mxu0 %v1481_v17 }
 0x608   :  { %v936_v3 = vpop.f32.mrb[8].mxu0 }
 0x609   :  { %v1010_v5 = vadd.f32 %v1009_v62, %v936_v3  ;;  %v1410_v6 = vpop.f32.mrb[9].mxu0 }
 0x60b   :  { %v1020_v7 = vadd.f32 %v1312_v4, %v1010_v5 }
 0x60d   :  { %vm1021_vm9 = vcmp.gt.f32.partialorder %v1020_v7, 0.0  ;;  %v1022_v8 = vmul.f32 0.01, %v1020_v7 }
 0x60f   :  { %v1023_v9 = vsel %vm1021_vm9, %v1020_v7, %v1022_v8 }
 0x610   :  { %1421 = vmatmul.mubr.msk.f32.vlgmr.msra.gmra.mrb[10].mxu0 %vm100_vm4, %v1023_v9 }
 0x611   :  { %1430 = vmatprep.mubr.msk.f32.mxu0 %vm1480_vm3, %v1481_v17  ;;  %v1186_v17 = vld [vmem:[%s1813_s26] sm:$0xf]  ;;  %s1455_s26 = scalar_lea.vmem %s1281_s16, 128 }
 0x612   :  { %1429 = vmatpush3.msk.msra.mxu0 %vm1198_vm10, %v1186_v17  ;;  %p1456_p0 = scmp.ne.s32.totalorder %s1281_s16, %s1455_s26  ;;  %p1461_p2 = scmp.lt.s32.totalorder %s1455_s26, %s1455_s26 }
 0x614   :  { %p1462_p3 = por %p1461_p2, %p1460_p1 }
 0x616   :  { %p1463_p4 = pnand %p1462_p3, %p1456_p0 }
 0x6e3   :  { %v1102_v13 = vpop.f32.mrb[10].mxu0 }
 0x6e4   :  { %v1103_v14 = vadd.f32 %v1313_v12, %v1102_v13  ;;  %v1422_v15 = vpop.f32.mrb[11].mxu0 }
 0x6e6   :  { %1424 = vmatpush3.msra.mxu1 %v1103_v14 }
 0x6e7   :  { %1426 = vmatmul.mubr.msk.f32.vlgmr.msra.gmra.mrb[12].mxu1 %vm189_vm0, %v1106_v16 }
 0x7ba   :  { %v1182_v19 = vpop.f32.mrb[12].mxu1 }
 0x7bb   :  { %v1183_v20 = vadd.f32 %v1182_v19, %v1111_v18  ;;  %v1427_v21 = vpop.f32.mrb[13].mxu1 }
 0x7bd   :  { %1431 = vmatmul.mubr.msk.f32.vlgmr.msra.gmra.mrb[0].mxu0 %vm1194_vm11, %v1183_v20 }
 0x890   :  { %v1268_v25 = vpop.f32.mrb[0].mxu0 }
 0x891   :  { %v1446_v26 = vadd.f32 %v1445_v24, %v1268_v25  ;;  %v1432_v27 = vpop.f32.mrb[1].mxu0 }
 0x893   :  { %1273 = vst.msk [vmem:[#allocation2] sm:$0xff] %vm189_vm0, %v1446_v26 }
 0x894   :  { %1466 = shalt.err (!%p1463_p4)
}
 0x895   :  { %s1467_s27 = scalar_lea.hbm %s1815_s28, 128 }
 0x896   :  { %p1468_p5 = scmp.ne.s32.totalorder %s1815_s28, %s1467_s27  ;;  %p1471_p6 = scmp.lt.u32.totalorder %s1467_s27, %s1815_s28 }
 0x898   :  { %p1473_p7 = pnand %p1471_p6, %p1468_p5 }
 0x89a   :  { %1476 = shalt.err (!%p1473_p7)
}
 0x89b   :  { %1283 = dma.vmem_to_hbm [thread:$0]  %s1281_s16, 128, %s1815_s28, [#allocation3]  }
 0x89c   :  { %1477 = dma.done.wait [#allocation3], 128  }
 0x89d   :  { %1478 = vsyncadd [#allocation3], 4294967168 }
 0x89e   :  { %1287 = vsyncpa [#allocation3], 1 }

</bundles_post_ra>
